<compile_context>
chip_gen: v6e
topology: v6e:2x2x1
jax: 0.10.0
libtpu: 0.0.40
codegen_flags: <defaults>
</compile_context>

<pallas_src>
import jax
import jax.numpy as jnp
from jax.experimental import pallas as pl
from jax.experimental.pallas import tpu as pltpu

_TARGET_CHUNK_BYTES = 8 << 20   # ~8 MiB per DMA chunk (no VMEM involved)
_NUM_DMA_SLOTS = 4              # up to 4 outstanding HBM->HBM DMAs


def id_forward(x: jax.Array) -> jax.Array:
    """Forward of Id: y = x.

    An identity requires no data movement, so the fastest correct
    implementation launches no kernel at all (any copy kernel pays a full
    HBM read + write of the tensor).
    """
    return x


def _choose_lane_dense_cols(n_elems: int):
    """Largest lane-dense (multiple-of-128) column count that tiles n_elems."""
    for cols in (8192, 4096, 2048, 1024, 512, 256, 128):
        if n_elems % cols == 0:
            return cols
    return None


def _make_dma_copy_kernel(total_rows: int, chunk_rows: int, num_slots: int):
    """Kernel: chunked HBM->HBM copy with up to `num_slots` outstanding DMAs."""
    n_full = total_rows // chunk_rows
    tail_rows = total_rows - n_full * chunk_rows
    live = max(1, min(num_slots, n_full))  # outstanding main-chunk DMAs

    def kernel(x_hbm, o_hbm, sems):
        # Tail chunk (ragged leftover rows): its own semaphore slot; issue it
        # first so it overlaps with the main chunks, wait at the very end.
        if tail_rows:
            t0 = n_full * chunk_rows
            pltpu.make_async_copy(
                x_hbm.at[pl.ds(t0, tail_rows)],
                o_hbm.at[pl.ds(t0, tail_rows)],
                sems.at[num_slots],
            ).start()

        if n_full:
            def start_chunk(c):
                pltpu.make_async_copy(
                    x_hbm.at[pl.ds(c * chunk_rows, chunk_rows)],
                    o_hbm.at[pl.ds(c * chunk_rows, chunk_rows)],
                    sems.at[c % live],
                ).start()

            def wait_slot(slot):
                # Waits only need matching shape (byte count) + the semaphore.
                pltpu.make_async_copy(
                    x_hbm.at[pl.ds(0, chunk_rows)],
                    o_hbm.at[pl.ds(0, chunk_rows)],
                    sems.at[slot],
                ).wait()

            # Prime up to `live` outstanding DMAs (small static unrolled loop).
            for c in range(live):
                start_chunk(c)

            # Steady state: retire the oldest DMA in a slot, then refill it.
            if n_full > live:
                @pl.loop(live, n_full)
                def _(c):
                    wait_slot(c % live)
                    start_chunk(c)

            # Drain the remaining outstanding DMAs.
            for s in range(live):
                wait_slot(s)

        if tail_rows:
            t0 = n_full * chunk_rows
            pltpu.make_async_copy(
                x_hbm.at[pl.ds(t0, tail_rows)],
                o_hbm.at[pl.ds(t0, tail_rows)],
                sems.at[num_slots],
            ).wait()

    return kernel


def id_forward_copy(x: jax.Array, *, chunk_bytes: int = _TARGET_CHUNK_BYTES) -> jax.Array:
    """Explicit Pallas copy variant of Id (materializes a fresh output buffer).

    Pure HBM->HBM DMA: no VMEM staging, no vector loads/stores.  Kept to
    demonstrate / validate the Pallas path; prefer id_forward() in practice.
    """
    size = int(x.size)
    if size == 0:
        return x
    dtype = x.dtype
    itemsize = x.dtype.itemsize

    cols = _choose_lane_dense_cols(size)
    if cols is None:
        # Ragged element count (not a multiple of 128): chunked flat 1-D
        # HBM->HBM copy.  No VMEM is used, so large ragged tensors are safe.
        view = x.reshape(size)
        total_rows, row_bytes = size, itemsize
    else:
        rows = size // cols
        view = x.reshape(rows, cols)
        total_rows, row_bytes = rows, cols * itemsize

    chunk_rows = max(1, chunk_bytes // row_bytes)
    if cols is not None and chunk_rows > 1:
        # Keep chunk boundaries sublane-aligned (8 rows f32 / 16 bf16 / 32 i8).
        sublane = max(8, 32 // itemsize)
        chunk_rows = max(sublane, (chunk_rows // sublane) * sublane)
    chunk_rows = min(chunk_rows, total_rows)

    kernel = _make_dma_copy_kernel(total_rows, chunk_rows, _NUM_DMA_SLOTS)

    out = pl.pallas_call(
        kernel,
        out_shape=jax.ShapeDtypeStruct(view.shape, dtype),
        in_specs=[pl.BlockSpec(memory_space=pl.ANY)],
        out_specs=pl.BlockSpec(memory_space=pl.ANY),
        scratch_shapes=[pltpu.SemaphoreType.DMA((_NUM_DMA_SLOTS + 1,))],
        cost_estimate=pl.CostEstimate(
            flops=0, transcendentals=0, bytes_accessed=2 * size * itemsize),
    )(view)
    return out.reshape(x.shape)


if __name__ == "__main__":
    key = jax.random.PRNGKey(0)
    # NCHW input consistent with a caffenet-style module: (N, C, H, W).
    x = jax.random.normal(key, (2, 4, 16, 16), dtype=jnp.float32)

    # 1) True Id forward: no kernel, no HBM traffic.
    y = id_forward(x)
    jax.block_until_ready(y)
    assert y.shape == x.shape and y.dtype == x.dtype
    assert bool(jnp.all(y == x))

    # 2) Pallas HBM->HBM DMA copy on the module-sized input (single chunk).
    y2 = id_forward_copy(x)
    jax.block_until_ready(y2)
    assert y2.shape == x.shape and y2.dtype == x.dtype
    assert bool(jnp.all(y2 == x))

    # 3) Larger lane-dense input with a small chunk size to exercise the
    #    steady-state path: 8 chunks, 4 outstanding DMAs (prime/loop/drain).
    x_big = jax.random.normal(jax.random.PRNGKey(0), (8, 16, 64, 64), dtype=jnp.float32)
    y3 = id_forward_copy(x_big, chunk_bytes=1 << 18)
    jax.block_until_ready(y3)
    assert y3.shape == x_big.shape and y3.dtype == x_big.dtype
    assert bool(jnp.all(y3 == x_big))

    # 4) Ragged element count (1155 = 3*5*7*11, not a multiple of 128):
    #    flat 1-D chunked copy with a tail chunk on its own semaphore.
    x_rag = jax.random.normal(jax.random.PRNGKey(0), (3, 5, 7, 11), dtype=jnp.float32)
    y4 = id_forward_copy(x_rag, chunk_bytes=1 << 10)
    jax.block_until_ready(y4)
    assert y4.shape == x_rag.shape and y4.dtype == x_rag.dtype
    assert bool(jnp.all(y4 == x_rag))

    print("KERNEL_OK")
</pallas_src>

<mosaic_0001>
module attributes {stable_mosaic.version = 11 : i64} {
  func.func @kernel(%arg0: memref<1x2048xf32, #tpu.memory_space<any>>, %arg1: memref<1x2048xf32, #tpu.memory_space<any>>, %arg2: memref<5x!tpu.dma_semaphore, #tpu.memory_space<semaphore_mem>>) attributes {dimension_semantics = [], scalar_prefetch = 0 : i64, scratch_operands = 1 : i64, tpu.core_type = #tpu.core_type<tc>} {
    %c0_i32 = arith.constant 0 : i32
    %c0_i32_0 = arith.constant 0 : i32
    %c0_i32_1 = arith.constant 0 : i32
    %0 = tpu.memref_slice %arg0[%c0_i32_0, %c0_i32_1] : memref<1x2048xf32, #tpu.memory_space<any>> -> memref<1x2048xf32, #tpu.memory_space<any>>
    %c0_i32_2 = arith.constant 0 : i32
    %c0_i32_3 = arith.constant 0 : i32
    %1 = tpu.memref_slice %arg1[%c0_i32_2, %c0_i32_3] : memref<1x2048xf32, #tpu.memory_space<any>> -> memref<1x2048xf32, #tpu.memory_space<any>>
    %2 = tpu.memref_slice %arg2[%c0_i32] : memref<5x!tpu.dma_semaphore, #tpu.memory_space<semaphore_mem>> -> memref<1x!tpu.dma_semaphore, #tpu.memory_space<semaphore_mem>>
    %3 = tpu.memref_squeeze %2 : memref<1x!tpu.dma_semaphore, #tpu.memory_space<semaphore_mem>> -> memref<!tpu.dma_semaphore, #tpu.memory_space<semaphore_mem>>
    tpu.enqueue_dma source(%0 : memref<1x2048xf32, #tpu.memory_space<any>>) target(%1 : memref<1x2048xf32, #tpu.memory_space<any>>) target_semaphore(%3 : memref<!tpu.dma_semaphore, #tpu.memory_space<semaphore_mem>>)
    %c0_i32_4 = arith.constant 0 : i32
    %c0_i32_5 = arith.constant 0 : i32
    %c0_i32_6 = arith.constant 0 : i32
    %4 = tpu.memref_slice %arg0[%c0_i32_5, %c0_i32_6] : memref<1x2048xf32, #tpu.memory_space<any>> -> memref<1x2048xf32, #tpu.memory_space<any>>
    %c0_i32_7 = arith.constant 0 : i32
    %c0_i32_8 = arith.constant 0 : i32
    %5 = tpu.memref_slice %arg1[%c0_i32_7, %c0_i32_8] : memref<1x2048xf32, #tpu.memory_space<any>> -> memref<1x2048xf32, #tpu.memory_space<any>>
    %6 = tpu.memref_slice %arg2[%c0_i32_4] : memref<5x!tpu.dma_semaphore, #tpu.memory_space<semaphore_mem>> -> memref<1x!tpu.dma_semaphore, #tpu.memory_space<semaphore_mem>>
    %7 = tpu.memref_squeeze %6 : memref<1x!tpu.dma_semaphore, #tpu.memory_space<semaphore_mem>> -> memref<!tpu.dma_semaphore, #tpu.memory_space<semaphore_mem>>
    tpu.wait_dma2 semaphore(%7 : memref<!tpu.dma_semaphore, #tpu.memory_space<semaphore_mem>>) src(%4 : memref<1x2048xf32, #tpu.memory_space<any>>) dst(%5 : memref<1x2048xf32, #tpu.memory_space<any>>)
    return
  }
}

</mosaic_0001>

<bundles_post_ra>
// kernel: tpu_custom_call.1
= control target key start
LH: loop header
LB: loop body
LE: loop exit
PB: predicated region body
PF: predicated region fallthrough
CT: control target
= control target key end

     0   :  { %s60_s6 = smov [#allocation2]   ;;  %s61_s7 = smov 131072   ;;  %s79_s0 = inlined_call_operand.hbm [shape: f32[1,2048], index: 0, kind: input, shape index: {}]   ;;  %s80_s1 = inlined_call_operand.hbm [shape: f32[1,2048], index: 1, kind: output, shape index: {}]  }
   0x1   :  { %s62_s8 = smov 0  }
   0x2   :  { %12 = dma.general %s79_s0, 256, %s80_s1, %s60_s6, %s61_s7, [#allocation4], %s62_s8, 0  }
   0x3   :  { %58 = dma.done.wait [#allocation2], 256 }
   0x4   :  { %59 = vsyncadd [#allocation2], 4294967040 }
   0x5   :  { %16 = vsyncmov [#allocation2] }
   0x8   :  { %s17_s13 = vpop.sfrf %16 }
   0x9   :  { %p50_p0 = scmp.ne.s32.totalorder %s17_s13, 0 }
   0xb   :  { %21 = shalt.err (%p50_p0)  }
   0xc   :  { %23 = vsyncmov [#allocation2 + $0x1] }
   0xf   :  { %s24_s14 = vpop.sfrf %23 }
  0x10   :  { %p51_p1 = scmp.ne.s32.totalorder %s24_s14, 0 }
  0x12   :  { %28 = shalt.err (%p51_p1)  }
  0x13   :  { %30 = vsyncmov [#allocation2 + $0x2] }
  0x16   :  { %s31_s15 = vpop.sfrf %30 }
  0x17   :  { %p52_p2 = scmp.ne.s32.totalorder %s31_s15, 0 }
  0x19   :  { %35 = shalt.err (%p52_p2)  }
  0x1a   :  { %37 = vsyncmov [#allocation2 + $0x3] }
  0x1d   :  { %s38_s16 = vpop.sfrf %37 }
  0x1e   :  { %p53_p3 = scmp.ne.s32.totalorder %s38_s16, 0 }
  0x20   :  { %42 = shalt.err (%p53_p3)  }
  0x21   :  { %44 = vsyncmov [#allocation2 + $0x4] }
  0x24   :  { %s45_s0 = vpop.sfrf %44 }
  0x25   :  { %p54_p4 = scmp.ne.s32.totalorder %s45_s0, 0 }
  0x27   :  { %49 = shalt.err (%p54_p4)  }

</bundles_post_ra>
